<compile_context>
chip_gen: v7x
topology: tpu7x:2x2x1
jax: 0.10.0
libtpu: 0.0.40
codegen_flags: <defaults>
</compile_context>

<pallas_src>
import functools

import numpy as np

import jax
import jax.numpy as jnp
from jax.experimental import pallas as pl
from jax.experimental.pallas import tpu as pltpu


# ---------------------------------------------------------------------------
# Host-side helpers
# ---------------------------------------------------------------------------

def _round_up(n, m):
    return ((n + m - 1) // m) * m


def _avg_band_matrix(L, kernel_size):
    """Dense (L, L) operator A with moving_mean = A @ x (f32 numpy).

    Matches AvgPool1d(kernel_size, stride=1) applied to a series padded with
    pad = (kernel_size - 1) // 2 edge-replicated rows on each side (the PyTorch
    `repeat` + AvgPool1d semantics).  Only valid for odd kernel_size: even k
    changes the PyTorch output length.
    """
    pad = (kernel_size - 1) // 2
    src = np.clip(
        np.arange(L)[:, None] + np.arange(kernel_size)[None, :] - pad, 0, L - 1)
    A = np.zeros((L, L), np.float32)
    np.add.at(A, (np.repeat(np.arange(L), kernel_size), src.ravel()),
              np.float32(1.0 / kernel_size))
    return A


def _pick_time_tile(L, max_rows=256):
    """Full L for short series; otherwise the largest divisor of L <= max_rows,
    preferring 256-/128-aligned tiles (MXU-friendly M dim), else multiples of 8."""
    if L % 8 != 0 or L <= max_rows:
        return L
    for align in (256, 128, 8):
        best = 0
        for d in range(align, max_rows + 1, align):
            if L % d == 0:
                best = d
        if best:
            return best
    return L


def _vmem_budget():
    """(max x-block bytes, vmem_limit_bytes), derived from the chip's VMEM."""
    try:
        cap = int(pltpu.get_tpu_info().vmem_capacity_bytes)
    except Exception:
        cap = 64 * 1024 * 1024
    if cap >= 100 * 1024 * 1024:                      # v5e / v6e: 128 MiB VMEM
        return 12 * 1024 * 1024, 96 * 1024 * 1024
    return 5 * 1024 * 1024, 48 * 1024 * 1024          # v7x: 64 MiB VMEM


def _pick_lane_tile(R, L, itemsize, max_lanes, max_block_bytes):
    """Lane-tile width: full R when R <= 128, else a multiple of 128 whose
    (L, RT) x-block fits the byte budget, capped so that R >= 256 always gives
    >= 2 lane tiles (v7x megacore split lands on the lane axis)."""
    if R <= 128:
        return R
    cap = max(128, (max_block_bytes // (L * itemsize)) // 128 * 128)
    cap = min(cap, max_lanes)
    R128 = _round_up(R, 128)
    if R128 >= 256:
        cap = min(cap, max(128, (R128 // 2) // 128 * 128))
    return max(128, min(cap, R128) // 128 * 128)


def _band_operators(L, kernel_size, tL, W, pad_al, dtype):
    """Stacked per-time-tile band operators (nT, tL, W); tile t's band starts at
    clip(t*tL - pad_al, 0, L - W) (same formula recomputed inside the kernel)."""
    A = _avg_band_matrix(L, kernel_size)
    nT = L // tL
    starts = np.clip(np.arange(nT) * tL - pad_al, 0, L - W)
    bands = np.stack(
        [A[t * tL:(t + 1) * tL, starts[t]:starts[t] + W] for t in range(nT)])
    return jnp.asarray(bands, dtype=dtype)


# ---------------------------------------------------------------------------
# series_decomp kernel
# ---------------------------------------------------------------------------

def _make_decomp_kernel(pad_al):
    def kernel(a_ref, x_ref, res_ref, mean_ref):
        # a_ref:    (nT, tL, W) band operators, VMEM-resident.
        # x_ref:    (L,  RT) input series, full time extent, lane-dense.
        # res_ref:  (tL, RT) x - moving_mean for this (lane, time) tile.
        # mean_ref: (tL, RT) moving_mean for this tile.
        t = pl.program_id(1)
        tL = res_ref.shape[0]
        L = x_ref.shape[0]
        W = a_ref.shape[-1]

        # Band start: same integer formula used to build a_ref on the host;
        # always a multiple of 8, so the slice stays tile-aligned.
        s = pl.multiple_of(jnp.clip(t * tL - pad_al, 0, L - W), 8)
        x_band = x_ref[pl.ds(s, W), :]                       # (W, RT) native dtype

        # One small matmul on the (otherwise idle) MXU covers the whole k-term
        # window sum for this tile; operands stay in the input dtype (bf16 runs
        # at native MXU rate), accumulation in f32.
        mean = jnp.dot(a_ref[t], x_band.astype(a_ref.dtype),
                       preferred_element_type=jnp.float32)   # (tL, RT) f32

        # Only the tL rows needed for the subtraction are touched again —
        # no full-(L, RT) upcast / reload per inner step.
        row0 = pl.multiple_of(t * tL, 8)
        x_rows = x_ref[pl.ds(row0, tL), :]

        mean_ref[...] = mean.astype(mean_ref.dtype)
        res_ref[...] = (x_rows.astype(jnp.float32) - mean).astype(res_ref.dtype)
    return kernel


def series_decomp(x, kernel_size=25, *, max_lane_tile=2048, max_time_tile=256):
    """Returns (res, moving_mean) like the PyTorch series_decomp.

    x: (B, L, C).  moving_mean = AvgPool1d(kernel_size, stride=1) over time
    with edge-replication padding; res = x - moving_mean.  Odd kernel_size only.
    """
    if kernel_size % 2 != 1:
        raise ValueError("series_decomp: kernel_size must be odd to match the "
                         "PyTorch repeat+AvgPool1d output length.")
    B, L, C = x.shape
    dtype = x.dtype
    itemsize = jnp.dtype(dtype).itemsize

    max_block_bytes, vmem_limit = _vmem_budget()

    # Time tiling + band geometry.
    pad = (kernel_size - 1) // 2
    tL = _pick_time_tile(L, max_rows=max_time_tile)
    if tL < L:
        pad_al = _round_up(pad, 8)
        W = min(L, tL + 2 * pad_al)
    else:
        pad_al, W = 0, L
    nT = L // tL

    # Banded averaging operator; bf16 for bf16 inputs (native MXU), f32 otherwise.
    a_dtype = jnp.bfloat16 if dtype == jnp.bfloat16 else jnp.float32
    bands = _band_operators(L, kernel_size, tL, W, pad_al, a_dtype)

    # Lane-dense 2-D view: time -> sublanes, batch*channel -> lanes.
    # TODO(synk): these transposes are standalone XLA copies; if the surrounding
    # block can consume/produce the (L, B*C) layout keep it and drop them.
    R = B * C
    x2 = jnp.transpose(x, (1, 0, 2)).reshape(L, R)

    RT = _pick_lane_tile(R, L, itemsize, max_lane_tile, max_block_bytes)
    nR = pl.cdiv(R, RT)                   # ragged last lane tile handled by masking
    grid = (nR, nT)                       # lane tiles outer, time tiles inner

    res2, mean2 = pl.pallas_call(
        _make_decomp_kernel(pad_al),
        out_shape=(jax.ShapeDtypeStruct((L, R), dtype),
                   jax.ShapeDtypeStruct((L, R), dtype)),
        grid_spec=pltpu.PrefetchScalarGridSpec(
            num_scalar_prefetch=0,
            grid=grid,
            in_specs=[
                # Band operators: constant block index -> VMEM-resident, DMA'd once.
                pl.BlockSpec((nT, tL, W), lambda r, t: (0, 0, 0)),
                # Input series: full time extent, current lane tile; index is
                # constant across the inner time axis -> each lane tile of x is
                # DMA'd exactly once.
                pl.BlockSpec((L, RT), lambda r, t: (0, r)),
            ],
            out_specs=(
                pl.BlockSpec((tL, RT), lambda r, t: (t, r)),
                pl.BlockSpec((tL, RT), lambda r, t: (t, r)),
            ),
        ),
        compiler_params=pltpu.CompilerParams(
            # Lane axis "parallel" so a v7x megacore split gives each core a
            # disjoint (L, RT) x block; time axis "arbitrary".
            dimension_semantics=("parallel", "arbitrary"),
            vmem_limit_bytes=vmem_limit),
    )(bands, x2)

    def _unflatten(y2):
        return y2.reshape(L, B, C).transpose(1, 0, 2)

    return _unflatten(res2), _unflatten(mean2)


# ---------------------------------------------------------------------------
# ScaleBlock tail: softmax scale mixing + residual add
# ---------------------------------------------------------------------------

def _scale_mix_kernel(w_ref, res_ref, x_ref, out_ref):
    # w_ref: (B, k) softmaxed weights in SMEM; res_ref: (k, 1, T, N);
    # x_ref / out_ref: (1, T, N).
    b = pl.program_id(0)
    k = res_ref.shape[0]
    acc = x_ref[0].astype(jnp.float32)
    for i in range(k):                               # k = top_k, small & static
        acc = acc + w_ref[b, i] * res_ref[i, 0].astype(jnp.float32)
    out_ref[0] = acc.astype(out_ref.dtype)


def scale_mix(res_stack, x, weight):
    """res = sum_i softmax(weight)[b, i] * res_stack[i, b] + x  (ScaleBlock tail)."""
    k, B, T, N = res_stack.shape
    w = jax.nn.softmax(weight.astype(jnp.float32), axis=1)   # (B, k), tiny host-side op
    return pl.pallas_call(
        _scale_mix_kernel,
        out_shape=jax.ShapeDtypeStruct((B, T, N), x.dtype),
        grid_spec=pltpu.PrefetchScalarGridSpec(
            num_scalar_prefetch=1,                   # softmaxed weights land in SMEM
            grid=(B,),
            in_specs=[
                pl.BlockSpec((k, 1, T, N), lambda b, w: (0, b, 0, 0)),
                pl.BlockSpec((1, T, N), lambda b, w: (b, 0, 0)),
            ],
            out_specs=pl.BlockSpec((1, T, N), lambda b, w: (b, 0, 0)),
        ),
        compiler_params=pltpu.CompilerParams(
            dimension_semantics=("parallel",)),
    )(w, res_stack, x)


# ---------------------------------------------------------------------------
# Pure-JAX references + self-test
# ---------------------------------------------------------------------------

def _decomp_reference(x, kernel_size=25):
    pad = (kernel_size - 1) // 2
    front = jnp.repeat(x[:, :1, :], pad, axis=1)
    end = jnp.repeat(x[:, -1:, :], pad, axis=1)
    xp = jnp.concatenate([front, x, end], axis=1)
    L = x.shape[1]
    windows = jnp.stack([xp[:, j:j + L, :] for j in range(kernel_size)], axis=0)
    mean = jnp.mean(windows, axis=0)
    return x - mean, mean


def _scale_mix_reference(res_stack, x, weight):
    w = jax.nn.softmax(weight.astype(jnp.float32), axis=1)
    mixed = jnp.einsum("kbtn,bk->btn", res_stack.astype(jnp.float32), w)
    return (mixed + x.astype(jnp.float32)).astype(x.dtype)


if __name__ == "__main__":
    key = jax.random.PRNGKey(0)
    k1, k2, k3, k4, k5 = jax.random.split(key, 5)

    decomp = jax.jit(functools.partial(series_decomp, kernel_size=25))

    # 1) f32, typical seq_len, B*C < 128 (single lane tile, dense time tile).
    x1 = jax.random.normal(k1, (2, 96, 16), dtype=jnp.float32)
    res1, mean1 = jax.block_until_ready(decomp(x1))
    rr, mr = _decomp_reference(x1, 25)
    assert np.allclose(np.asarray(res1), np.asarray(rr), atol=1e-5, rtol=1e-5)
    assert np.allclose(np.asarray(mean1), np.asarray(mr), atol=1e-5, rtol=1e-5)

    # 2) bf16, longer seq_len: banded contraction + native-bf16 MXU + 2 lane tiles.
    x2 = jax.random.normal(k2, (4, 512, 64), dtype=jnp.float32).astype(jnp.bfloat16)
    res2, mean2 = jax.block_until_ready(decomp(x2))
    rr, mr = _decomp_reference(x2.astype(jnp.float32), 25)
    assert np.allclose(np.asarray(res2).astype(np.float32), np.asarray(rr),
                       atol=5e-2, rtol=5e-2)
    assert np.allclose(np.asarray(mean2).astype(np.float32), np.asarray(mr),
                       atol=5e-2, rtol=5e-2)

    # 3) f32, B*C not a multiple of 128: ragged last lane tile (masked stores).
    x3 = jax.random.normal(k3, (5, 96, 32), dtype=jnp.float32)
    res3, mean3 = jax.block_until_ready(decomp(x3))
    rr, mr = _decomp_reference(x3, 25)
    assert np.allclose(np.asarray(res3), np.asarray(rr), atol=1e-5, rtol=1e-5)
    assert np.allclose(np.asarray(mean3), np.asarray(mr), atol=1e-5, rtol=1e-5)

    # 4) ScaleBlock tail: learned-softmax scale mixing + residual add.
    B, T, N, topk = 2, 32, 16, 2
    res_stack = jax.random.normal(k4, (topk, B, T, N), dtype=jnp.float32)
    xs = jax.random.normal(k5, (B, T, N), dtype=jnp.float32)
    weight = jax.random.normal(jax.random.PRNGKey(1), (B, topk), dtype=jnp.float32)
    mixed = jax.block_until_ready(jax.jit(scale_mix)(res_stack, xs, weight))
    ref = _scale_mix_reference(res_stack, xs, weight)
    assert np.allclose(np.asarray(mixed), np.asarray(ref), atol=1e-5, rtol=1e-5)

    print("KERNEL_OK")
</pallas_src>

<mosaic_0001>
module attributes {stable_mosaic.version = 11 : i64} {
  func.func @kernel(%arg0: i32, %arg1: i32, %arg2: memref<1x96x96xf32, #tpu.memory_space<vmem>>, %arg3: memref<96x32xf32, #tpu.memory_space<vmem>>, %arg4: memref<96x32xf32, #tpu.memory_space<vmem>>, %arg5: memref<96x32xf32, #tpu.memory_space<vmem>>) attributes {dimension_semantics = [#tpu.dimension_semantics<parallel>, #tpu.dimension_semantics<arbitrary>], iteration_bounds = array<i64: 1, 1>, scalar_prefetch = 0 : i64, scratch_operands = 0 : i64, tpu.core_type = #tpu.core_type<tc>, window_params = [{pipeline_mode = #tpu.pipeline_mode<synchronous>, transform_indices = @transform_0, window_bounds = array<i64: 1, 96, 96>}, {transform_indices = @transform_1, window_bounds = array<i64: 96, 32>}, {transform_indices = @transform_2, window_bounds = array<i64: 96, 32>}, {transform_indices = @transform_3, window_bounds = array<i64: 96, 32>}]} {
    %c96_i32 = arith.constant 96 : i32
    %0 = arith.muli %arg1, %c96_i32 : i32
    %c0_i32 = arith.constant 0 : i32
    %1 = arith.subi %0, %c0_i32 : i32
    %c0_i32_0 = arith.constant 0 : i32
    %c0_i32_1 = arith.constant 0 : i32
    %2 = arith.maxsi %c0_i32_0, %1 : i32
    %3 = arith.minsi %c0_i32_1, %2 : i32
    %4 = tpu.assume_multiple %3, 8 : i32
    %5 = arith.index_cast %4 : i32 to index
    %c0 = arith.constant 0 : index
    %6 = vector.load %arg3[%5, %c0] : memref<96x32xf32, #tpu.memory_space<vmem>>, vector<96x32xf32>
    %7 = arith.index_cast %arg1 : i32 to index
    %c0_2 = arith.constant 0 : index
    %c0_3 = arith.constant 0 : index
    %8 = vector.load %arg2[%7, %c0_2, %c0_3] : memref<1x96x96xf32, #tpu.memory_space<vmem>>, vector<1x96x96xf32>
    %9 = vector.shape_cast %8 : vector<1x96x96xf32> to vector<96x96xf32>
    %cst = arith.constant dense<0.000000e+00> : vector<96x32xf32>
    %10 = tpu.matmul %9, %6, %cst {dimension_numbers = #tpu.dot_dimension_numbers<[1], [0], [0], [1], [0, 0, 1, 1], [], []>} : vector<96x96xf32>, vector<96x32xf32>, vector<96x32xf32> -> vector<96x32xf32>
    %c96_i32_4 = arith.constant 96 : i32
    %11 = arith.muli %arg1, %c96_i32_4 : i32
    %12 = tpu.assume_multiple %11, 8 : i32
    %13 = arith.index_cast %12 : i32 to index
    %c0_5 = arith.constant 0 : index
    %14 = vector.load %arg3[%13, %c0_5] : memref<96x32xf32, #tpu.memory_space<vmem>>, vector<96x32xf32>
    %c0_6 = arith.constant 0 : index
    %c0_7 = arith.constant 0 : index
    %15 = vector.load %arg5[%c0_6, %c0_7] : memref<96x32xf32, #tpu.memory_space<vmem>>, vector<96x32xf32>
    tpu.vector_store %arg5[%c0_6, %c0_7], %10 {strides = array<i32>} : memref<96x32xf32, #tpu.memory_space<vmem>>, vector<96x32xf32>,
    %16 = arith.subf %14, %10 : vector<96x32xf32>
    %c0_8 = arith.constant 0 : index
    %c0_9 = arith.constant 0 : index
    %17 = vector.load %arg4[%c0_8, %c0_9] : memref<96x32xf32, #tpu.memory_space<vmem>>, vector<96x32xf32>
    tpu.vector_store %arg4[%c0_8, %c0_9], %16 {strides = array<i32>} : memref<96x32xf32, #tpu.memory_space<vmem>>, vector<96x32xf32>,
    return
  }
  func.func @transform_0(%arg0: i32, %arg1: i32) -> (i32, i32, i32) {
    %c0_i32 = arith.constant 0 : i32
    %c0_i32_0 = arith.constant 0 : i32
    %c0_i32_1 = arith.constant 0 : i32
    %c0_i32_2 = arith.constant 0 : i32
    return %c0_i32, %c0_i32_0, %c0_i32_1 : i32, i32, i32
  }
  func.func @transform_1(%arg0: i32, %arg1: i32) -> (i32, i32) {
    %c0_i32 = arith.constant 0 : i32
    %c0_i32_0 = arith.constant 0 : i32
    return %c0_i32, %arg0 : i32, i32
  }
  func.func @transform_2(%arg0: i32, %arg1: i32) -> (i32, i32) {
    %c0_i32 = arith.constant 0 : i32
    return %arg1, %arg0 : i32, i32
  }
  func.func @transform_3(%arg0: i32, %arg1: i32) -> (i32, i32) {
    %c0_i32 = arith.constant 0 : i32
    return %arg1, %arg0 : i32, i32
  }
}

</mosaic_0001>

<bundles_post_ra>
// kernel: series_decomp.1
= control target key start
LH: loop header
LB: loop body
LE: loop exit
PB: predicated region body
PF: predicated region fallthrough
CT: control target
= control target key end

     0   :  { %vm44_vm0 = vcmask 785408   ;;  %vm219_vm1 = vcmask 261120   ;;  %s627_s1 = inlined_call_operand.vmem [shape: f32[96,32], index: 1, kind: input, shape index: {}]   ;;  %s628_s0 = inlined_call_operand.vmem [shape: f32[1,96,96], index: 0, kind: input, shape index: {}]   ;;  %s629_s3 = inlined_call_operand.vmem [shape: f32[96,32], index: 3, kind: output, shape index: {1}]   ;;  %s630_s2 = inlined_call_operand.vmem [shape: f32[96,32], index: 2, kind: output, shape index: {0}]  }
   0x1   :  { %v402_v0 = vld [vmem:[%s627_s1] sm:$0xff]  ;;  %v407_v1 = vld [vmem:[%s627_s1 + $0x8] sm:$0xff]  ;;  %v412_v2 = vld [vmem:[%s627_s1 + $0x10] sm:$0xff] }
   0x2   :  { %v343_v3 = vpack.c.bf16 %v407_v1, %v402_v0  ;;  %v419_v4 = vld [vmem:[%s627_s1 + $0x18] sm:$0xff]  ;;  %v426_v6 = vld [vmem:[%s627_s1 + $0x20] sm:$0xff]  ;;  %v431_v7 = vld [vmem:[%s627_s1 + $0x28] sm:$0xff] }
   0x3   :  { %v347_v5 = vpack.c.bf16 %v419_v4, %v412_v2  ;;  %v32_v8 = vld [vmem:[%s628_s0] sm:$0xff]  ;;  %v38_v9 = vld [vmem:[%s628_s0 + $0x30] sm:$0xff]  ;;  %v351_v10 = vpack.c.bf16 %v431_v7, %v426_v6  ;;  %v449_v12 = vld [vmem:[%s627_s1 + $0x38] sm:$0xff] }
   0x4   :  { %344 = vmatprep.subr.bf16.mxu0 %v343_v3  ;;  %367 = vmatprep.subr.bf16.mxu1 %v343_v3  ;;  %v444_v11 = vld [vmem:[%s627_s1 + $0x30] sm:$0xff]  ;;  %v458_v14 = vld [vmem:[%s627_s1 + $0x40] sm:$0xff]  ;;  %v463_v15 = vld [vmem:[%s627_s1 + $0x48] sm:$0xff] }
   0x5   :  { %346 = vmatpush3.bf16.msra.mxu0 %v343_v3  ;;  %373 = vmatpush3.bf16.msra.mxu1 %v343_v3  ;;  %v355_v13 = vpack.c.bf16 %v449_v12, %v444_v11  ;;  %v359_v16 = vpack.c.bf16 %v463_v15, %v458_v14  ;;  %v470_v17 = vld [vmem:[%s627_s1 + $0x50] sm:$0xff]  ;;  %v475_v18 = vld [vmem:[%s627_s1 + $0x58] sm:$0xff]  ;;  %v33_v20 = vld [vmem:[%s628_s0 + $0x8] sm:$0xff] }
   0x6   :  { %348 = vmatprep.subr.bf16.mxu0 %v347_v5  ;;  %368 = vmatprep.subr.bf16.mxu1 %v347_v5  ;;  %v363_v19 = vpack.c.bf16 %v475_v18, %v470_v17  ;;  %v39_v21 = vld [vmem:[%s628_s0 + $0x38] sm:$0xff]  ;;  %v34_v22 = vld [vmem:[%s628_s0 + $0x10] sm:$0xff]  ;;  %v40_v23 = vld [vmem:[%s628_s0 + $0x40] sm:$0xff] }
   0x7   :  { %325 = vmatprep.mubr.msk.f32.mxu0 %vm44_vm0, %v32_v8  ;;  %334 = vmatprep.mubr.msk.f32.mxu1 %vm44_vm0, %v38_v9  ;;  %v35_v24 = vld [vmem:[%s628_s0 + $0x18] sm:$0xff]  ;;  %v41_v25 = vld [vmem:[%s628_s0 + $0x48] sm:$0xff]  ;;  %v36_v26 = vld [vmem:[%s628_s0 + $0x20] sm:$0xff] }
   0x8   :  { %v42_v27 = vld [vmem:[%s628_s0 + $0x50] sm:$0xff]  ;;  %v37_v28 = vld [vmem:[%s628_s0 + $0x28] sm:$0xff]  ;;  %v43_v29 = vld [vmem:[%s628_s0 + $0x58] sm:$0xff] }
   0x9   :  { %350 = vmatpush3.bf16.msra.mxu0 %v347_v5  ;;  %374 = vmatpush3.bf16.msra.mxu1 %v347_v5 }
   0xa   :  { %352 = vmatprep.subr.bf16.mxu0 %v351_v10  ;;  %369 = vmatprep.subr.bf16.mxu1 %v351_v10 }
   0xd   :  { %354 = vmatpush3.bf16.msra.mxu0 %v351_v10  ;;  %375 = vmatpush3.bf16.msra.mxu1 %v351_v10 }
   0xe   :  { %356 = vmatprep.subr.bf16.mxu0 %v355_v13  ;;  %370 = vmatprep.subr.bf16.mxu1 %v355_v13 }
  0x11   :  { %358 = vmatpush3.bf16.msra.mxu0 %v355_v13  ;;  %376 = vmatpush3.bf16.msra.mxu1 %v355_v13 }
  0x12   :  { %360 = vmatprep.subr.bf16.mxu0 %v359_v16  ;;  %371 = vmatprep.subr.bf16.mxu1 %v359_v16 }
  0x15   :  { %362 = vmatpush3.bf16.msra.mxu0 %v359_v16  ;;  %377 = vmatpush3.bf16.msra.mxu1 %v359_v16 }
  0x16   :  { %364 = vmatprep.subr.bf16.mxu0 %v363_v19  ;;  %372 = vmatprep.subr.bf16.mxu1 %v363_v19 }
  0x19   :  { %366 = vmatpush3.bf16.msra.mxu0 %v363_v19  ;;  %378 = vmatpush3.bf16.msra.mxu1 %v363_v19 }
  0x1c   :  { %326 = vmatmul.mubr.msk.f32.vlgmr.msra.gmra.mrb[0].mxu0 %vm44_vm0, %v33_v20  ;;  %335 = vmatmul.mubr.msk.f32.vlgmr.msra.gmra.mrb[0].mxu1 %vm44_vm0, %v39_v21 }
  0x1d   :  { %328 = vmatprep.mubr.msk.f32.mxu0 %vm44_vm0, %v34_v22  ;;  %337 = vmatprep.mubr.msk.f32.mxu1 %vm44_vm0, %v40_v23 }
  0x20   :  { %329 = vmatmul.mubr.msk.f32.gmra.mrb[2].mxu0 %vm44_vm0, %v35_v24  ;;  %338 = vmatmul.mubr.msk.f32.gmra.mrb[2].mxu1 %vm44_vm0, %v41_v25 }
  0x21   :  { %331 = vmatprep.mubr.msk.f32.mxu0 %vm44_vm0, %v36_v26  ;;  %340 = vmatprep.mubr.msk.f32.mxu1 %vm44_vm0, %v42_v27 }
  0x24   :  { %332 = vmatmul.mubr.msk.f32.gmra.mrb[4].mxu0 %vm44_vm0, %v37_v28  ;;  %341 = vmatmul.mubr.msk.f32.gmra.mrb[4].mxu1 %vm44_vm0, %v43_v29 }
  0xef   :  { %v327_v30 = vpop.f32.mrb[0].mxu0  ;;  %v336_v31 = vpop.f32.mrb[0].mxu1 }
  0xf0   :  { %221 = vst.msk [vmem:[%s629_s3 + $0x8] sm:$0xff] %vm219_vm1, %v327_v30  ;;  %v233_v32 = vsub.f32 %v407_v1, %v327_v30  ;;  %227 = vst.msk [vmem:[%s629_s3 + $0x38] sm:$0xff] %vm219_vm1, %v336_v31  ;;  %v239_v33 = vsub.f32 %v449_v12, %v336_v31  ;;  %v147_v34 = vpop.f32.mrb[1].mxu0  ;;  %v177_v35 = vpop.f32.mrb[1].mxu1 }
  0xf1   :  { %220 = vst.msk [vmem:[%s629_s3] sm:$0xff] %vm219_vm1, %v147_v34  ;;  %v232_v36 = vsub.f32 %v402_v0, %v147_v34  ;;  %226 = vst.msk [vmem:[%s629_s3 + $0x30] sm:$0xff] %vm219_vm1, %v177_v35  ;;  %v238_v37 = vsub.f32 %v444_v11, %v177_v35 }
  0xf2   :  { %245 = vst.msk [vmem:[%s630_s2 + $0x8] sm:$0xff] %vm219_vm1, %v233_v32  ;;  %251 = vst.msk [vmem:[%s630_s2 + $0x38] sm:$0xff] %vm219_vm1, %v239_v33 }
  0xf3   :  { %244 = vst.msk [vmem:[%s630_s2] sm:$0xff] %vm219_vm1, %v232_v36  ;;  %250 = vst.msk [vmem:[%s630_s2 + $0x30] sm:$0xff] %vm219_vm1, %v238_v37  ;;  %v330_v38 = vpop.f32.mrb[2].mxu0  ;;  %v339_v39 = vpop.f32.mrb[2].mxu1 }
  0xf4   :  { %223 = vst.msk [vmem:[%s629_s3 + $0x18] sm:$0xff] %vm219_vm1, %v330_v38  ;;  %v235_v40 = vsub.f32 %v419_v4, %v330_v38  ;;  %229 = vst.msk [vmem:[%s629_s3 + $0x48] sm:$0xff] %vm219_vm1, %v339_v39  ;;  %v241_v41 = vsub.f32 %v463_v15, %v339_v39  ;;  %v157_v42 = vpop.f32.mrb[3].mxu0  ;;  %v187_v43 = vpop.f32.mrb[3].mxu1 }
  0xf5   :  { %222 = vst.msk [vmem:[%s629_s3 + $0x10] sm:$0xff] %vm219_vm1, %v157_v42  ;;  %v234_v44 = vsub.f32 %v412_v2, %v157_v42  ;;  %228 = vst.msk [vmem:[%s629_s3 + $0x40] sm:$0xff] %vm219_vm1, %v187_v43  ;;  %v240_v45 = vsub.f32 %v458_v14, %v187_v43 }
  0xf6   :  { %247 = vst.msk [vmem:[%s630_s2 + $0x18] sm:$0xff] %vm219_vm1, %v235_v40  ;;  %253 = vst.msk [vmem:[%s630_s2 + $0x48] sm:$0xff] %vm219_vm1, %v241_v41 }
  0xf7   :  { %246 = vst.msk [vmem:[%s630_s2 + $0x10] sm:$0xff] %vm219_vm1, %v234_v44  ;;  %252 = vst.msk [vmem:[%s630_s2 + $0x40] sm:$0xff] %vm219_vm1, %v240_v45  ;;  %v333_v46 = vpop.f32.mrb[4].mxu0  ;;  %v342_v47 = vpop.f32.mrb[4].mxu1 }
  0xf8   :  { %225 = vst.msk [vmem:[%s629_s3 + $0x28] sm:$0xff] %vm219_vm1, %v333_v46  ;;  %v237_v48 = vsub.f32 %v431_v7, %v333_v46  ;;  %231 = vst.msk [vmem:[%s629_s3 + $0x58] sm:$0xff] %vm219_vm1, %v342_v47  ;;  %v243_v49 = vsub.f32 %v475_v18, %v342_v47  ;;  %v167_v50 = vpop.f32.mrb[5].mxu0  ;;  %v197_v51 = vpop.f32.mrb[5].mxu1 }
  0xf9   :  { %224 = vst.msk [vmem:[%s629_s3 + $0x20] sm:$0xff] %vm219_vm1, %v167_v50  ;;  %v236_v52 = vsub.f32 %v426_v6, %v167_v50  ;;  %230 = vst.msk [vmem:[%s629_s3 + $0x50] sm:$0xff] %vm219_vm1, %v197_v51  ;;  %v242_v53 = vsub.f32 %v470_v17, %v197_v51 }
  0xfa   :  { %249 = vst.msk [vmem:[%s630_s2 + $0x28] sm:$0xff] %vm219_vm1, %v237_v48  ;;  %255 = vst.msk [vmem:[%s630_s2 + $0x58] sm:$0xff] %vm219_vm1, %v243_v49 }
  0xfb   :  { %248 = vst.msk [vmem:[%s630_s2 + $0x20] sm:$0xff] %vm219_vm1, %v236_v52  ;;  %254 = vst.msk [vmem:[%s630_s2 + $0x50] sm:$0xff] %vm219_vm1, %v242_v53 }

</bundles_post_ra>
